<compile_context>
chip_gen: v6e
topology: v6e:2x2x1
jax: 0.10.0
libtpu: 0.0.40
codegen_flags: <defaults>
</compile_context>

<pallas_src>
import math
from functools import partial

import jax
import jax.numpy as jnp
from jax.experimental import pallas as pl
from jax.experimental.pallas import tpu as pltpu


# --------------------------------------------------------------------------
# helpers
# --------------------------------------------------------------------------
def _round_up(n, m):
    return ((n + m - 1) // m) * m


def _pad_cols(a, cols):
    return jnp.pad(a, ((0, 0), (0, cols - a.shape[1])))


def _im2col(x, k):
    """x: (B, C, H, W) -> (B*Ho*Wo, C*k*k), column order ci*k*k + ky*k + kx
    (matches PyTorch conv weight.reshape(Cout, Cin*k*k))."""
    B, C, H, W = x.shape
    Ho, Wo = H - k + 1, W - k + 1
    cols = [x[:, :, ky:ky + Ho, kx:kx + Wo] for ky in range(k) for kx in range(k)]
    pat = jnp.stack(cols, axis=-1)              # (B, C, Ho, Wo, k*k)
    pat = pat.transpose(0, 2, 3, 1, 4)          # (B, Ho, Wo, C, k*k)
    return pat.reshape(B * Ho * Wo, C * k * k)


def _maxpool2x2(x):
    """x: (B, C, H, W) -> (B, C, H//2, W//2) (kernel 2, stride 2)."""
    B, C, H, W = x.shape
    return x.reshape(B, C, H // 2, 2, W // 2, 2).max(axis=(3, 5))
# TODO(synk): maxpool / im2col patch extraction are JAX-side layout plumbing;
#             they could be moved in-kernel with strided slices if needed.


# --------------------------------------------------------------------------
# Pallas kernels
# --------------------------------------------------------------------------
def _linear_kernel(x_ref, w_ref, b_ref, o_ref, *, apply_relu):
    # x: (block_m, K) bf16, w: (K, N) bf16, b: (1, N) f32 -> o: (block_m, N) f32
    acc = jnp.dot(x_ref[...], w_ref[...], preferred_element_type=jnp.float32)
    acc = acc + b_ref[...]
    if apply_relu:
        acc = jnp.maximum(acc, 0.0)
    o_ref[...] = acc.astype(o_ref.dtype)


def _mlp_head_kernel(x_ref, w1_ref, b1_ref, w2_ref, b2_ref, w3_ref, b3_ref, o_ref):
    # Fully fused fc1 -> ReLU -> fc2 -> ReLU -> out. bf16 MXU inputs, f32
    # accumulation / bias / ReLU, bf16 re-cast only for the next dot.
    h = jnp.dot(x_ref[...], w1_ref[...], preferred_element_type=jnp.float32) + b1_ref[...]
    h = jnp.maximum(h, 0.0).astype(jnp.bfloat16)
    h = jnp.dot(h, w2_ref[...], preferred_element_type=jnp.float32) + b2_ref[...]
    h = jnp.maximum(h, 0.0).astype(jnp.bfloat16)
    out = jnp.dot(h, w3_ref[...], preferred_element_type=jnp.float32) + b3_ref[...]
    o_ref[...] = out.astype(o_ref.dtype)


def _linear_pallas(x, w, b, *, relu, block_m=128):
    """relu(x @ w + b) with row tiling. x bf16 (M, K), w bf16 (K, N), b f32 (1, N)."""
    M, K = x.shape
    Kw, N = w.shape
    assert K == Kw
    Mp = _round_up(M, block_m)
    x_p = jnp.pad(x, ((0, Mp - M), (0, 0)))
    grid = (Mp // block_m,)

    flops = 2 * Mp * K * N
    bytes_acc = Mp * K * 2 + K * N * 2 + N * 4 + Mp * N * 4

    out = pl.pallas_call(
        partial(_linear_kernel, apply_relu=relu),
        out_shape=jax.ShapeDtypeStruct((Mp, N), jnp.float32),
        grid_spec=pltpu.PrefetchScalarGridSpec(
            num_scalar_prefetch=0,
            grid=grid,
            in_specs=[
                pl.BlockSpec((block_m, K), lambda i: (i, 0)),   # row tile of patches
                pl.BlockSpec((K, N), lambda i: (0, 0)),         # resident weight
                pl.BlockSpec((1, N), lambda i: (0, 0)),         # bias
            ],
            out_specs=pl.BlockSpec((block_m, N), lambda i: (i, 0)),
        ),
        compiler_params=pltpu.CompilerParams(dimension_semantics=("parallel",)),
        cost_estimate=pl.CostEstimate(flops=flops, transcendentals=0,
                                      bytes_accessed=bytes_acc),
    )(x_p, w, b)
    return out[:M]


def _mlp_head_pallas(x, prep, *, block_b=None):
    """Fused FC head. x bf16 (B, 512 padded)."""
    M, K = x.shape
    w1, b1 = prep["w_fc1"], prep["b_fc1"]
    w2, b2 = prep["w_fc2"], prep["b_fc2"]
    w3, b3 = prep["w_out"], prep["b_out"]
    H1, H2, N = w1.shape[1], w2.shape[1], w3.shape[1]

    if block_b is None:
        block_b = min(256, _round_up(M, 8))   # multiple of 8 sublanes
    Mp = _round_up(M, block_b)
    x_p = jnp.pad(x, ((0, Mp - M), (0, 0)))
    grid = (Mp // block_b,)

    flops = 2 * Mp * (K * H1 + H1 * H2 + H2 * N)
    bytes_acc = (Mp * K * 2 + (w1.size + w2.size + w3.size) * 2
                 + (b1.size + b2.size + b3.size) * 4 + Mp * N * 4)

    out = pl.pallas_call(
        _mlp_head_kernel,
        out_shape=jax.ShapeDtypeStruct((Mp, N), jnp.float32),
        grid_spec=pltpu.PrefetchScalarGridSpec(
            num_scalar_prefetch=0,
            grid=grid,
            in_specs=[
                pl.BlockSpec((block_b, K), lambda i: (i, 0)),
                pl.BlockSpec((K, H1), lambda i: (0, 0)),
                pl.BlockSpec((1, H1), lambda i: (0, 0)),
                pl.BlockSpec((H1, H2), lambda i: (0, 0)),
                pl.BlockSpec((1, H2), lambda i: (0, 0)),
                pl.BlockSpec((H2, N), lambda i: (0, 0)),
                pl.BlockSpec((1, N), lambda i: (0, 0)),
            ],
            out_specs=pl.BlockSpec((block_b, N), lambda i: (i, 0)),
        ),
        compiler_params=pltpu.CompilerParams(dimension_semantics=("parallel",)),
        cost_estimate=pl.CostEstimate(flops=flops, transcendentals=0,
                                      bytes_accessed=bytes_acc),
    )(x_p, w1, b1, w2, b2, w3, b3)
    return out[:M]


# --------------------------------------------------------------------------
# pure-JAX references for the same padded/bf16 parameterization
# --------------------------------------------------------------------------
def _linear_ref(x, w, b, *, relu, block_m=None):
    acc = jnp.dot(x, w, preferred_element_type=jnp.float32) + b
    return jnp.maximum(acc, 0.0) if relu else acc


def _mlp_head_ref(x, prep, *, block_b=None):
    h = jnp.maximum(jnp.dot(x, prep["w_fc1"], preferred_element_type=jnp.float32)
                    + prep["b_fc1"], 0.0)
    h = jnp.maximum(jnp.dot(h.astype(jnp.bfloat16), prep["w_fc2"],
                            preferred_element_type=jnp.float32) + prep["b_fc2"], 0.0)
    return (jnp.dot(h.astype(jnp.bfloat16), prep["w_out"],
                    preferred_element_type=jnp.float32) + prep["b_out"])


# --------------------------------------------------------------------------
# full forward (shared plumbing; linear_fn / mlp_fn = Pallas or reference)
# --------------------------------------------------------------------------
def convnet_forward(x, prep, n_patches, *, linear_fn, mlp_fn):
    B = x.shape[0]

    # conv1 (3->6, k5) + ReLU, as im2col matmul
    pat1 = _pad_cols(_im2col(x, 5), 128).astype(jnp.bfloat16)         # (B*784, 128)
    h = linear_fn(pat1, prep["w_conv1"], prep["b_conv1"], relu=True)  # (B*784, 128) f32
    h = h[:, :6].reshape(B, 28, 28, 6).transpose(0, 3, 1, 2)          # (B, 6, 28, 28)
    h = _maxpool2x2(h)                                                # (B, 6, 14, 14)

    # conv2 (6->16, k5) + ReLU
    pat2 = _pad_cols(_im2col(h, 5), 256).astype(jnp.bfloat16)         # (B*100, 256)
    h = linear_fn(pat2, prep["w_conv2"], prep["b_conv2"], relu=True)  # (B*100, 128)
    h = h[:, :16].reshape(B, 10, 10, 16).transpose(0, 3, 1, 2)        # (B, 16, 10, 10)
    h = _maxpool2x2(h)                                                # (B, 16, 5, 5)

    # flatten in PyTorch NCHW order -> fused FC head
    feat = _pad_cols(h.reshape(B, 16 * 5 * 5), 512).astype(jnp.bfloat16)  # (B, 512)
    out = mlp_fn(feat, prep)                                          # (B, 128) f32
    return out[:, :n_patches]


# --------------------------------------------------------------------------
# parameters (PyTorch-style init, then converted to padded bf16 matmul form)
# --------------------------------------------------------------------------
def init_torch_style_params(key, n_patches):
    def u(k, shape, fan_in):
        bound = 1.0 / math.sqrt(fan_in)
        return jax.random.uniform(k, shape, jnp.float32, -bound, bound)

    ks = jax.random.split(key, 10)
    return {
        "conv1_w": u(ks[0], (6, 3, 5, 5), 75),
        "conv1_b": u(ks[1], (6,), 75),
        "conv2_w": u(ks[2], (16, 6, 5, 5), 150),
        "conv2_b": u(ks[3], (16,), 150),
        "fc1_w": u(ks[4], (120, 400), 400),
        "fc1_b": u(ks[5], (120,), 400),
        "fc2_w": u(ks[6], (84, 120), 120),
        "fc2_b": u(ks[7], (84,), 120),
        "out_w": u(ks[8], (n_patches, 84), 84),
        "out_b": u(ks[9], (n_patches,), 84),
    }


def prepare_params(p, n_patches):
    """Transpose to (in, out), zero-pad both dims to multiples of 128 lanes,
    cast weights to bf16 (biases stay f32)."""
    def pad2(a, rows, cols, dtype):
        z = jnp.zeros((rows, cols), jnp.float32)
        return z.at[: a.shape[0], : a.shape[1]].set(a).astype(dtype)

    n_pad = _round_up(n_patches, 128)
    w_c1 = p["conv1_w"].reshape(6, 75).T      # (75, 6)
    w_c2 = p["conv2_w"].reshape(16, 150).T    # (150, 16)
    return {
        "w_conv1": pad2(w_c1, 128, 128, jnp.bfloat16),
        "b_conv1": pad2(p["conv1_b"][None, :], 1, 128, jnp.float32),
        "w_conv2": pad2(w_c2, 256, 128, jnp.bfloat16),
        "b_conv2": pad2(p["conv2_b"][None, :], 1, 128, jnp.float32),
        "w_fc1": pad2(p["fc1_w"].T, 512, 128, jnp.bfloat16),
        "b_fc1": pad2(p["fc1_b"][None, :], 1, 128, jnp.float32),
        "w_fc2": pad2(p["fc2_w"].T, 128, 128, jnp.bfloat16),
        "b_fc2": pad2(p["fc2_b"][None, :], 1, 128, jnp.float32),
        "w_out": pad2(p["out_w"].T, 128, n_pad, jnp.bfloat16),
        "b_out": pad2(p["out_b"][None, :], 1, n_pad, jnp.float32),
    }


# --------------------------------------------------------------------------
if __name__ == "__main__":
    n_patches = 64
    batch = 4

    key = jax.random.PRNGKey(0)
    key, kx = jax.random.split(key)
    x = jax.random.normal(kx, (batch, 3, 32, 32), jnp.float32)   # CIFAR-10 sized input

    raw = init_torch_style_params(key, n_patches)
    prep = prepare_params(raw, n_patches)

    fwd_pallas = jax.jit(partial(convnet_forward, n_patches=n_patches,
                                 linear_fn=_linear_pallas, mlp_fn=_mlp_head_pallas))
    fwd_ref = jax.jit(partial(convnet_forward, n_patches=n_patches,
                              linear_fn=_linear_ref, mlp_fn=_mlp_head_ref))

    out = jax.block_until_ready(fwd_pallas(x, prep))
    ref = jax.block_until_ready(fwd_ref(x, prep))

    assert out.shape == (batch, n_patches)
    assert jnp.allclose(out, ref, atol=1e-2, rtol=1e-2), "mismatch vs JAX reference"

    print("KERNEL_OK")
</pallas_src>

<mosaic_0001>
module attributes {stable_mosaic.version = 11 : i64} {
  func.func @_linear_kernel(%arg0: i32, %arg1: memref<128x128xbf16, #tpu.memory_space<vmem>>, %arg2: memref<128x128xbf16, #tpu.memory_space<vmem>>, %arg3: memref<1x128xf32, #tpu.memory_space<vmem>>, %arg4: memref<128x128xf32, #tpu.memory_space<vmem>>) attributes {dimension_semantics = [#tpu.dimension_semantics<parallel>], iteration_bounds = array<i64: 25>, scalar_prefetch = 0 : i64, scratch_operands = 0 : i64, tpu.core_type = #tpu.core_type<tc>, window_params = [{transform_indices = @transform_0, window_bounds = array<i64: 128, 128>}, {pipeline_mode = #tpu.pipeline_mode<synchronous>, transform_indices = @transform_1, window_bounds = array<i64: 128, 128>}, {pipeline_mode = #tpu.pipeline_mode<synchronous>, transform_indices = @transform_2, window_bounds = array<i64: 1, 128>}, {transform_indices = @transform_3, window_bounds = array<i64: 128, 128>}]} {
    %c0 = arith.constant 0 : index
    %c0_0 = arith.constant 0 : index
    %0 = vector.load %arg1[%c0, %c0_0] : memref<128x128xbf16, #tpu.memory_space<vmem>>, vector<128x128xbf16>
    %c0_1 = arith.constant 0 : index
    %c0_2 = arith.constant 0 : index
    %1 = vector.load %arg2[%c0_1, %c0_2] : memref<128x128xbf16, #tpu.memory_space<vmem>>, vector<128x128xbf16>
    %cst = arith.constant dense<0.000000e+00> : vector<128x128xf32>
    %2 = tpu.matmul %0, %1, %cst {dimension_numbers = #tpu.dot_dimension_numbers<[1], [0], [0], [1], [0, 0, 1, 1], [], []>} : vector<128x128xbf16>, vector<128x128xbf16>, vector<128x128xf32> -> vector<128x128xf32>
    %c0_3 = arith.constant 0 : index
    %c0_4 = arith.constant 0 : index
    %3 = vector.load %arg3[%c0_3, %c0_4] : memref<1x128xf32, #tpu.memory_space<vmem>>, vector<1x128xf32>
    %4 = vector.broadcast %3 : vector<1x128xf32> to vector<128x128xf32>
    %5 = arith.addf %2, %4 : vector<128x128xf32>
    %cst_5 = arith.constant 0.000000e+00 : f32
    %6 = vector.broadcast %cst_5 : f32 to vector<128x128xf32>
    %7 = arith.maximumf %5, %6 : vector<128x128xf32>
    %c0_6 = arith.constant 0 : index
    %c0_7 = arith.constant 0 : index
    %8 = vector.load %arg4[%c0_6, %c0_7] : memref<128x128xf32, #tpu.memory_space<vmem>>, vector<128x128xf32>
    tpu.vector_store %arg4[%c0_6, %c0_7], %7 {strides = array<i32>} : memref<128x128xf32, #tpu.memory_space<vmem>>, vector<128x128xf32>,
    return
  }
  func.func @transform_0(%arg0: i32) -> (i32, i32) {
    %c0_i32 = arith.constant 0 : i32
    %c0_i32_0 = arith.constant 0 : i32
    return %arg0, %c0_i32 : i32, i32
  }
  func.func @transform_1(%arg0: i32) -> (i32, i32) {
    %c0_i32 = arith.constant 0 : i32
    %c0_i32_0 = arith.constant 0 : i32
    %c0_i32_1 = arith.constant 0 : i32
    return %c0_i32, %c0_i32_0 : i32, i32
  }
  func.func @transform_2(%arg0: i32) -> (i32, i32) {
    %c0_i32 = arith.constant 0 : i32
    %c0_i32_0 = arith.constant 0 : i32
    %c0_i32_1 = arith.constant 0 : i32
    return %c0_i32, %c0_i32_0 : i32, i32
  }
  func.func @transform_3(%arg0: i32) -> (i32, i32) {
    %c0_i32 = arith.constant 0 : i32
    %c0_i32_0 = arith.constant 0 : i32
    return %arg0, %c0_i32 : i32, i32
  }
}

module attributes {stable_mosaic.version = 11 : i64} {
  func.func @_linear_kernel(%arg0: i32, %arg1: memref<128x256xbf16, #tpu.memory_space<vmem>>, %arg2: memref<256x128xbf16, #tpu.memory_space<vmem>>, %arg3: memref<1x128xf32, #tpu.memory_space<vmem>>, %arg4: memref<128x128xf32, #tpu.memory_space<vmem>>) attributes {dimension_semantics = [#tpu.dimension_semantics<parallel>], iteration_bounds = array<i64: 4>, scalar_prefetch = 0 : i64, scratch_operands = 0 : i64, tpu.core_type = #tpu.core_type<tc>, window_params = [{transform_indices = @transform_0, window_bounds = array<i64: 128, 256>}, {pipeline_mode = #tpu.pipeline_mode<synchronous>, transform_indices = @transform_1, window_bounds = array<i64: 256, 128>}, {pipeline_mode = #tpu.pipeline_mode<synchronous>, transform_indices = @transform_2, window_bounds = array<i64: 1, 128>}, {transform_indices = @transform_3, window_bounds = array<i64: 128, 128>}]} {
    %c0 = arith.constant 0 : index
    %c0_0 = arith.constant 0 : index
    %0 = vector.load %arg1[%c0, %c0_0] : memref<128x256xbf16, #tpu.memory_space<vmem>>, vector<128x256xbf16>
    %c0_1 = arith.constant 0 : index
    %c0_2 = arith.constant 0 : index
    %1 = vector.load %arg2[%c0_1, %c0_2] : memref<256x128xbf16, #tpu.memory_space<vmem>>, vector<256x128xbf16>
    %cst = arith.constant dense<0.000000e+00> : vector<128x128xf32>
    %2 = tpu.matmul %0, %1, %cst {dimension_numbers = #tpu.dot_dimension_numbers<[1], [0], [0], [1], [0, 0, 1, 1], [], []>} : vector<128x256xbf16>, vector<256x128xbf16>, vector<128x128xf32> -> vector<128x128xf32>
    %c0_3 = arith.constant 0 : index
    %c0_4 = arith.constant 0 : index
    %3 = vector.load %arg3[%c0_3, %c0_4] : memref<1x128xf32, #tpu.memory_space<vmem>>, vector<1x128xf32>
    %4 = vector.broadcast %3 : vector<1x128xf32> to vector<128x128xf32>
    %5 = arith.addf %2, %4 : vector<128x128xf32>
    %cst_5 = arith.constant 0.000000e+00 : f32
    %6 = vector.broadcast %cst_5 : f32 to vector<128x128xf32>
    %7 = arith.maximumf %5, %6 : vector<128x128xf32>
    %c0_6 = arith.constant 0 : index
    %c0_7 = arith.constant 0 : index
    %8 = vector.load %arg4[%c0_6, %c0_7] : memref<128x128xf32, #tpu.memory_space<vmem>>, vector<128x128xf32>
    tpu.vector_store %arg4[%c0_6, %c0_7], %7 {strides = array<i32>} : memref<128x128xf32, #tpu.memory_space<vmem>>, vector<128x128xf32>,
    return
  }
  func.func @transform_0(%arg0: i32) -> (i32, i32) {
    %c0_i32 = arith.constant 0 : i32
    %c0_i32_0 = arith.constant 0 : i32
    return %arg0, %c0_i32 : i32, i32
  }
  func.func @transform_1(%arg0: i32) -> (i32, i32) {
    %c0_i32 = arith.constant 0 : i32
    %c0_i32_0 = arith.constant 0 : i32
    %c0_i32_1 = arith.constant 0 : i32
    return %c0_i32, %c0_i32_0 : i32, i32
  }
  func.func @transform_2(%arg0: i32) -> (i32, i32) {
    %c0_i32 = arith.constant 0 : i32
    %c0_i32_0 = arith.constant 0 : i32
    %c0_i32_1 = arith.constant 0 : i32
    return %c0_i32, %c0_i32_0 : i32, i32
  }
  func.func @transform_3(%arg0: i32) -> (i32, i32) {
    %c0_i32 = arith.constant 0 : i32
    %c0_i32_0 = arith.constant 0 : i32
    return %arg0, %c0_i32 : i32, i32
  }
}

module attributes {stable_mosaic.version = 11 : i64} {
  func.func @_mlp_head_kernel(%arg0: i32, %arg1: memref<8x512xbf16, #tpu.memory_space<vmem>>, %arg2: memref<512x128xbf16, #tpu.memory_space<vmem>>, %arg3: memref<1x128xf32, #tpu.memory_space<vmem>>, %arg4: memref<128x128xbf16, #tpu.memory_space<vmem>>, %arg5: memref<1x128xf32, #tpu.memory_space<vmem>>, %arg6: memref<128x128xbf16, #tpu.memory_space<vmem>>, %arg7: memref<1x128xf32, #tpu.memory_space<vmem>>, %arg8: memref<8x128xf32, #tpu.memory_space<vmem>>) attributes {dimension_semantics = [#tpu.dimension_semantics<parallel>], iteration_bounds = array<i64: 1>, scalar_prefetch = 0 : i64, scratch_operands = 0 : i64, tpu.core_type = #tpu.core_type<tc>, window_params = [{transform_indices = @transform_0, window_bounds = array<i64: 8, 512>}, {pipeline_mode = #tpu.pipeline_mode<synchronous>, transform_indices = @transform_1, window_bounds = array<i64: 512, 128>}, {pipeline_mode = #tpu.pipeline_mode<synchronous>, transform_indices = @transform_2, window_bounds = array<i64: 1, 128>}, {pipeline_mode = #tpu.pipeline_mode<synchronous>, transform_indices = @transform_3, window_bounds = array<i64: 128, 128>}, {pipeline_mode = #tpu.pipeline_mode<synchronous>, transform_indices = @transform_4, window_bounds = array<i64: 1, 128>}, {pipeline_mode = #tpu.pipeline_mode<synchronous>, transform_indices = @transform_5, window_bounds = array<i64: 128, 128>}, {pipeline_mode = #tpu.pipeline_mode<synchronous>, transform_indices = @transform_6, window_bounds = array<i64: 1, 128>}, {transform_indices = @transform_7, window_bounds = array<i64: 8, 128>}]} {
    %c0 = arith.constant 0 : index
    %c0_0 = arith.constant 0 : index
    %0 = vector.load %arg1[%c0, %c0_0] : memref<8x512xbf16, #tpu.memory_space<vmem>>, vector<8x512xbf16>
    %c0_1 = arith.constant 0 : index
    %c0_2 = arith.constant 0 : index
    %1 = vector.load %arg2[%c0_1, %c0_2] : memref<512x128xbf16, #tpu.memory_space<vmem>>, vector<512x128xbf16>
    %cst = arith.constant dense<0.000000e+00> : vector<8x128xf32>
    %2 = tpu.matmul %0, %1, %cst {dimension_numbers = #tpu.dot_dimension_numbers<[1], [0], [0], [1], [0, 0, 1, 1], [], []>} : vector<8x512xbf16>, vector<512x128xbf16>, vector<8x128xf32> -> vector<8x128xf32>
    %c0_3 = arith.constant 0 : index
    %c0_4 = arith.constant 0 : index
    %3 = vector.load %arg3[%c0_3, %c0_4] : memref<1x128xf32, #tpu.memory_space<vmem>>, vector<1x128xf32>
    %4 = vector.broadcast %3 : vector<1x128xf32> to vector<8x128xf32>
    %5 = arith.addf %2, %4 : vector<8x128xf32>
    %cst_5 = arith.constant 0.000000e+00 : f32
    %6 = vector.broadcast %cst_5 : f32 to vector<8x128xf32>
    %7 = arith.maximumf %5, %6 : vector<8x128xf32>
    %8 = arith.truncf %7 : vector<8x128xf32> to vector<8x128xbf16>
    %c0_6 = arith.constant 0 : index
    %c0_7 = arith.constant 0 : index
    %9 = vector.load %arg4[%c0_6, %c0_7] : memref<128x128xbf16, #tpu.memory_space<vmem>>, vector<128x128xbf16>
    %cst_8 = arith.constant dense<0.000000e+00> : vector<8x128xf32>
    %10 = tpu.matmul %8, %9, %cst_8 {dimension_numbers = #tpu.dot_dimension_numbers<[1], [0], [0], [1], [0, 0, 1, 1], [], []>} : vector<8x128xbf16>, vector<128x128xbf16>, vector<8x128xf32> -> vector<8x128xf32>
    %c0_9 = arith.constant 0 : index
    %c0_10 = arith.constant 0 : index
    %11 = vector.load %arg5[%c0_9, %c0_10] : memref<1x128xf32, #tpu.memory_space<vmem>>, vector<1x128xf32>
    %12 = vector.broadcast %11 : vector<1x128xf32> to vector<8x128xf32>
    %13 = arith.addf %10, %12 : vector<8x128xf32>
    %cst_11 = arith.constant 0.000000e+00 : f32
    %14 = vector.broadcast %cst_11 : f32 to vector<8x128xf32>
    %15 = arith.maximumf %13, %14 : vector<8x128xf32>
    %16 = arith.truncf %15 : vector<8x128xf32> to vector<8x128xbf16>
    %c0_12 = arith.constant 0 : index
    %c0_13 = arith.constant 0 : index
    %17 = vector.load %arg6[%c0_12, %c0_13] : memref<128x128xbf16, #tpu.memory_space<vmem>>, vector<128x128xbf16>
    %cst_14 = arith.constant dense<0.000000e+00> : vector<8x128xf32>
    %18 = tpu.matmul %16, %17, %cst_14 {dimension_numbers = #tpu.dot_dimension_numbers<[1], [0], [0], [1], [0, 0, 1, 1], [], []>} : vector<8x128xbf16>, vector<128x128xbf16>, vector<8x128xf32> -> vector<8x128xf32>
    %c0_15 = arith.constant 0 : index
    %c0_16 = arith.constant 0 : index
    %19 = vector.load %arg7[%c0_15, %c0_16] : memref<1x128xf32, #tpu.memory_space<vmem>>, vector<1x128xf32>
    %20 = vector.broadcast %19 : vector<1x128xf32> to vector<8x128xf32>
    %21 = arith.addf %18, %20 : vector<8x128xf32>
    %c0_17 = arith.constant 0 : index
    %c0_18 = arith.constant 0 : index
    %22 = vector.load %arg8[%c0_17, %c0_18] : memref<8x128xf32, #tpu.memory_space<vmem>>, vector<8x128xf32>
    tpu.vector_store %arg8[%c0_17, %c0_18], %21 {strides = array<i32>} : memref<8x128xf32, #tpu.memory_space<vmem>>, vector<8x128xf32>,
    return
  }
  func.func @transform_0(%arg0: i32) -> (i32, i32) {
    %c0_i32 = arith.constant 0 : i32
    %c0_i32_0 = arith.constant 0 : i32
    return %arg0, %c0_i32 : i32, i32
  }
  func.func @transform_1(%arg0: i32) -> (i32, i32) {
    %c0_i32 = arith.constant 0 : i32
    %c0_i32_0 = arith.constant 0 : i32
    %c0_i32_1 = arith.constant 0 : i32
    return %c0_i32, %c0_i32_0 : i32, i32
  }
  func.func @transform_2(%arg0: i32) -> (i32, i32) {
    %c0_i32 = arith.constant 0 : i32
    %c0_i32_0 = arith.constant 0 : i32
    %c0_i32_1 = arith.constant 0 : i32
    return %c0_i32, %c0_i32_0 : i32, i32
  }
  func.func @transform_3(%arg0: i32) -> (i32, i32) {
    %c0_i32 = arith.constant 0 : i32
    %c0_i32_0 = arith.constant 0 : i32
    %c0_i32_1 = arith.constant 0 : i32
    return %c0_i32, %c0_i32_0 : i32, i32
  }
  func.func @transform_4(%arg0: i32) -> (i32, i32) {
    %c0_i32 = arith.constant 0 : i32
    %c0_i32_0 = arith.constant 0 : i32
    %c0_i32_1 = arith.constant 0 : i32
    return %c0_i32, %c0_i32_0 : i32, i32
  }
  func.func @transform_5(%arg0: i32) -> (i32, i32) {
    %c0_i32 = arith.constant 0 : i32
    %c0_i32_0 = arith.constant 0 : i32
    %c0_i32_1 = arith.constant 0 : i32
    return %c0_i32, %c0_i32_0 : i32, i32
  }
  func.func @transform_6(%arg0: i32) -> (i32, i32) {
    %c0_i32 = arith.constant 0 : i32
    %c0_i32_0 = arith.constant 0 : i32
    %c0_i32_1 = arith.constant 0 : i32
    return %c0_i32, %c0_i32_0 : i32, i32
  }
  func.func @transform_7(%arg0: i32) -> (i32, i32) {
    %c0_i32 = arith.constant 0 : i32
    %c0_i32_0 = arith.constant 0 : i32
    return %arg0, %c0_i32 : i32, i32
  }
}

</mosaic_0001>

<bundles_post_ra>
// kernel: convnet_forward.3
= control target key start
LH: loop header
LB: loop body
LE: loop exit
PB: predicated region body
PF: predicated region fallthrough
CT: control target
= control target key end

     0   :  { %s639_s12 = smov 0   ;;  %s715_s0 = inlined_call_operand.vmem [shape: bf16[3200,128], index: 0, kind: input, shape index: {}]   ;;  %s716_s1 = inlined_call_operand.vmem [shape: bf16[128,128], index: 1, kind: input, shape index: {}]   ;;  %s717_s2 = inlined_call_operand.vmem [shape: f32[1,128], index: 2, kind: input, shape index: {}]   ;;  %s718_s3 = inlined_call_operand.vmem [shape: f32[3200,128], index: 3, kind: output, shape index: {}]  }
   0x1 LB: > { %s495_s13 = sadd.s32 4294967295, %s617_s12   ;;  %p499_p0 = scmp.ge.s32.totalorder %s617_s12, 1  ;;  %s617_s12 = sphi %s639_s12, %s13_s12  }
   0x2   : > { %p138_p1 = scmp.lt.s32.totalorder %s617_s12, 26 }
   0x4   : > { %p139_p2 = pnand %p499_p0, %p138_p1 }
   0x5   : > { %s500_s16 = sshll.u32 (!%p139_p2), %s495_s13, 4 }
   0x6   : > { %142 = sbr.rel (%p139_p2) target bundleno = 256 (0x100), region = 32  ;;  %p163_p3 = scmp.lt.s32.totalorder (!%p139_p2), %s500_s16, 399 }
   0xb   : > { %v595_v0 = vld [vmem:[%s716_s1 + $0x38] sm:$0xff]   ;;  %v596_v1 = vld [vmem:[%s716_s1 + $0x30] sm:$0xff]   ;;  %s720_s16 = smov (!%p163_p3, %s500_s16), 399  ;;  %v597_v2 = vld [vmem:[%s716_s1 + $0x28] sm:$0xff]  }
   0xc   : > { %539 = vmatprep.subr.bf16.mxu0 %v595_v0  ;;  %571 = vmatprep.subr.bf16.mxu1 %v595_v0  ;;  %s501_s21 = sshll.u32 %s720_s16, 2  ;;  %v598_v3 = vld [vmem:[%s716_s1 + $0x20] sm:$0xff]   ;;  %v599_v6 = vld [vmem:[%s716_s1 + $0x18] sm:$0xff]   ;;  %v600_v7 = vld [vmem:[%s716_s1 + $0x10] sm:$0xff]   ;;  %s503_s10 = sshll.u32 %s720_s16, 3 }
   0xd   : > { %540 = vmatpush3.bf16.msra.mxu0 %v595_v0  ;;  %579 = vmatpush3.bf16.msra.mxu1 %v595_v0  ;;  %s662_s24 = scalar_lea.vmem %s715_s0, %s501_s21  ;;  %v601_v8 = vld [vmem:[%s716_s1 + $0x8] sm:$0xff]   ;;  %v602_v9 = vld [vmem:[%s716_s1] sm:$0xff]   ;;  %s694_s14 = scalar_lea.vmem %s718_s3, %s503_s10 }
   0xe   : > { %541 = vmatprep.subr.bf16.mxu0 %v596_v1  ;;  %572 = vmatprep.subr.bf16.mxu1 %v596_v1  ;;  %v603_v4 = vld [vmem:[%s662_s24] sm:$0xff]   ;;  %v605_v10 = vld [vmem:[%s662_s24 + $0x8] sm:$0xff]   ;;  %v607_v12 = vld [vmem:[%s662_s24 + $0x10] sm:$0xff]  }
   0xf   : > { %v604_v5 = vld [vmem:[%s662_s24 + $0x20] sm:$0xff]   ;;  %555 = vmatprep.mubr.bf16.mxu0 %v603_v4  ;;  %v606_v11 = vld [vmem:[%s662_s24 + $0x28] sm:$0xff]   ;;  %v608_v13 = vld [vmem:[%s662_s24 + $0x30] sm:$0xff]  }
  0x10   : > { %563 = vmatprep.mubr.bf16.mxu1 %v604_v5  ;;  %v609_v14 = vld [vmem:[%s662_s24 + $0x18] sm:$0xff]   ;;  %v504_v16 = vld [vmem:[%s717_s2] ss:$0 sm:$0xff] }
  0x11   : > { %542 = vmatpush3.bf16.msra.mxu0 %v596_v1  ;;  %580 = vmatpush3.bf16.msra.mxu1 %v596_v1  ;;  %v610_v15 = vld [vmem:[%s662_s24 + $0x38] sm:$0xff]  }
  0x12   : > { %543 = vmatprep.subr.bf16.mxu0 %v597_v2  ;;  %573 = vmatprep.subr.bf16.mxu1 %v597_v2 }
  0x15   : > { %544 = vmatpush3.bf16.msra.mxu0 %v597_v2  ;;  %581 = vmatpush3.bf16.msra.mxu1 %v597_v2 }
  0x16   : > { %545 = vmatprep.subr.bf16.mxu0 %v598_v3  ;;  %574 = vmatprep.subr.bf16.mxu1 %v598_v3 }
  0x19   : > { %546 = vmatpush3.bf16.msra.mxu0 %v598_v3  ;;  %582 = vmatpush3.bf16.msra.mxu1 %v598_v3 }
  0x1a   : > { %547 = vmatprep.subr.bf16.mxu0 %v599_v6  ;;  %575 = vmatprep.subr.bf16.mxu1 %v599_v6 }
  0x1d   : > { %548 = vmatpush3.bf16.msra.mxu0 %v599_v6  ;;  %583 = vmatpush3.bf16.msra.mxu1 %v599_v6 }
  0x1e   : > { %549 = vmatprep.subr.bf16.mxu0 %v600_v7  ;;  %576 = vmatprep.subr.bf16.mxu1 %v600_v7 }
  0x21   : > { %550 = vmatpush3.bf16.msra.mxu0 %v600_v7  ;;  %584 = vmatpush3.bf16.msra.mxu1 %v600_v7 }
  0x22   : > { %551 = vmatprep.subr.bf16.mxu0 %v601_v8  ;;  %577 = vmatprep.subr.bf16.mxu1 %v601_v8 }
  0x25   : > { %552 = vmatpush3.bf16.msra.mxu0 %v601_v8  ;;  %585 = vmatpush3.bf16.msra.mxu1 %v601_v8 }
  0x26   : > { %553 = vmatprep.subr.bf16.mxu0 %v602_v9  ;;  %578 = vmatprep.subr.bf16.mxu1 %v602_v9 }
  0x29   : > { %554 = vmatpush3.bf16.msra.mxu0 %v602_v9  ;;  %586 = vmatpush3.bf16.msra.mxu1 %v602_v9 }
  0x2c   : > { %556 = vmatmul.mubr.bf16.vlgmr.msra.gmra.mxu0 %v605_v10  ;;  %564 = vmatmul.mubr.bf16.vlgmr.msra.gmra.mxu1 %v606_v11 }
  0x2d   : > { %559 = vmatprep.mubr.bf16.mxu0 %v607_v12  ;;  %567 = vmatprep.mubr.bf16.mxu1 %v608_v13 }
  0x34   : > { %560 = vmatmul.mubr.bf16.gmra.mxu0 %v609_v14  ;;  %568 = vmatmul.mubr.bf16.gmra.mxu1 %v610_v15 }
  0xec   : > { %v557_v17 = vpop.f32.mrf.mxu0  ;;  %v565_v18 = vpop.f32.mrf.mxu1 }
  0xed   : > { %v353_v19 = vadd.f32 %v557_v17, %v504_v16  ;;  %v385_v20 = vadd.f32 %v565_v18, %v504_v16 }
  0xee   : > { %v344_v21 = vpop.f32.mrf.mxu0  ;;  %v376_v22 = vpop.f32.mrf.mxu1 }
  0xef   : > { %v409_v23 = vmax.f32 %v353_v19, 0.0  ;;  %v417_v24 = vmax.f32 %v385_v20, 0.0  ;;  %v345_v25 = vadd.f32 %v504_v16, %v344_v21  ;;  %v377_v26 = vadd.f32 %v504_v16, %v376_v22 }
  0xf0   : > { %v558_v27 = vpop.f32.mrf.mxu0  ;;  %v566_v28 = vpop.f32.mrf.mxu1 }
  0xf1   : > { %425 = vst [vmem:[%s694_s14 + $0x10] sm:$0xff] %v409_v23  ;;  %433 = vst [vmem:[%s694_s14 + $0x50] sm:$0xff] %v417_v24  ;;  %v407_v29 = vmax.f32 %v345_v25, 0.0  ;;  %v415_v30 = vmax.f32 %v377_v26, 0.0  ;;  %v356_v31 = vadd.f32 %v558_v27, %v504_v16  ;;  %v388_v32 = vadd.f32 %v566_v28, %v504_v16 }
  0xf2   : > { %v347_v33 = vpop.f32.mrf.mxu0  ;;  %v379_v34 = vpop.f32.mrf.mxu1 }
  0xf3   : > { %423 = vst [vmem:[%s694_s14] sm:$0xff] %v407_v29  ;;  %431 = vst [vmem:[%s694_s14 + $0x40] sm:$0xff] %v415_v30  ;;  %v410_v35 = vmax.f32 %v356_v31, 0.0  ;;  %v418_v36 = vmax.f32 %v388_v32, 0.0  ;;  %v348_v37 = vadd.f32 %v504_v16, %v347_v33  ;;  %v380_v38 = vadd.f32 %v504_v16, %v379_v34 }
  0xf4   : > { %v561_v39 = vpop.f32.mrf.mxu0  ;;  %v569_v40 = vpop.f32.mrf.mxu1 }
  0xf5   : > { %426 = vst [vmem:[%s694_s14 + $0x18] sm:$0xff] %v410_v35  ;;  %434 = vst [vmem:[%s694_s14 + $0x58] sm:$0xff] %v418_v36  ;;  %v408_v41 = vmax.f32 %v348_v37, 0.0  ;;  %v416_v42 = vmax.f32 %v380_v38, 0.0  ;;  %v369_v43 = vadd.f32 %v561_v39, %v504_v16  ;;  %v401_v44 = vadd.f32 %v569_v40, %v504_v16 }
  0xf6   : > { %v360_v45 = vpop.f32.mrf.mxu0  ;;  %v392_v46 = vpop.f32.mrf.mxu1 }
  0xf7   : > { %424 = vst [vmem:[%s694_s14 + $0x8] sm:$0xff] %v408_v41  ;;  %432 = vst [vmem:[%s694_s14 + $0x48] sm:$0xff] %v416_v42  ;;  %v413_v47 = vmax.f32 %v369_v43, 0.0  ;;  %v421_v48 = vmax.f32 %v401_v44, 0.0  ;;  %v361_v49 = vadd.f32 %v504_v16, %v360_v45  ;;  %v393_v50 = vadd.f32 %v504_v16, %v392_v46 }
  0xf8   : > { %v562_v51 = vpop.f32.mrf.mxu0  ;;  %v570_v52 = vpop.f32.mrf.mxu1 }
  0xf9   : > { %429 = vst [vmem:[%s694_s14 + $0x30] sm:$0xff] %v413_v47  ;;  %437 = vst [vmem:[%s694_s14 + $0x70] sm:$0xff] %v421_v48  ;;  %v411_v53 = vmax.f32 %v361_v49, 0.0  ;;  %v419_v54 = vmax.f32 %v393_v50, 0.0  ;;  %v372_v55 = vadd.f32 %v562_v51, %v504_v16  ;;  %v404_v56 = vadd.f32 %v570_v52, %v504_v16 }
  0xfa   : > { %v363_v57 = vpop.f32.mrf.mxu0  ;;  %v395_v58 = vpop.f32.mrf.mxu1 }
  0xfb   : > { %427 = vst [vmem:[%s694_s14 + $0x20] sm:$0xff] %v411_v53  ;;  %435 = vst [vmem:[%s694_s14 + $0x60] sm:$0xff] %v419_v54  ;;  %v414_v59 = vmax.f32 %v372_v55, 0.0  ;;  %v422_v60 = vmax.f32 %v404_v56, 0.0  ;;  %v364_v61 = vadd.f32 %v504_v16, %v363_v57  ;;  %v396_v62 = vadd.f32 %v504_v16, %v395_v58 }
  0xfd   : > { %430 = vst [vmem:[%s694_s14 + $0x38] sm:$0xff] %v414_v59  ;;  %438 = vst [vmem:[%s694_s14 + $0x78] sm:$0xff] %v422_v60  ;;  %v412_v63 = vmax.f32 %v364_v61, 0.0  ;;  %v420_v0 = vmax.f32 %v396_v62, 0.0 }
  0xff   : > { %428 = vst [vmem:[%s694_s14 + $0x28] sm:$0xff] %v412_v63  ;;  %436 = vst [vmem:[%s694_s14 + $0x68] sm:$0xff] %v420_v0 }
 0x100 PF: > { %s13_s12 = sadd.s32 1, %s617_s12  }
 0x101   : > { %p10_p4 = scmp.ge.s32.totalorder %s13_s12, 27  }
 0x103   :  { %12 = sbr.rel (!%p10_p4) target bundleno = 1 (0x1), region = 62 }

// kernel: convnet_forward.4
= control target key start
LH: loop header
LB: loop body
LE: loop exit
PB: predicated region body
PF: predicated region fallthrough
CT: control target
= control target key end

     0   :  { %s796_s12 = smov 0   ;;  %s925_s0 = inlined_call_operand.vmem [shape: bf16[512,256], index: 0, kind: input, shape index: {}]   ;;  %s926_s1 = inlined_call_operand.vmem [shape: bf16[256,128], index: 1, kind: input, shape index: {}]   ;;  %s927_s2 = inlined_call_operand.vmem [shape: f32[1,128], index: 2, kind: input, shape index: {}]   ;;  %s928_s3 = inlined_call_operand.vmem [shape: f32[512,128], index: 3, kind: output, shape index: {}]  }
   0x1 LB: > { %s594_s13 = sadd.s32 4294967295, %s774_s12   ;;  %p598_p0 = scmp.ge.s32.totalorder %s774_s12, 1  ;;  %s774_s12 = sphi %s796_s12, %s13_s12  }
   0x2   : > { %p139_p1 = scmp.lt.s32.totalorder %s774_s12, 5 }
   0x4   : > { %p140_p2 = pnand %p598_p0, %p139_p1 }
   0x5   : > { %s599_s16 = sshll.u32 (!%p140_p2), %s594_s13, 4 }
   0x6   : > { %143 = sbr.rel (%p140_p2) target bundleno = 274 (0x112), region = 32  ;;  %p165_p3 = scmp.lt.s32.totalorder (!%p140_p2), %s599_s16, 63 }
   0xb   : > { %v728_v0 = vld [vmem:[%s926_s1 + $0x78] sm:$0xff]   ;;  %v730_v2 = vld [vmem:[%s926_s1 + $0x70] sm:$0xff]   ;;  %v732_v4 = vld [vmem:[%s926_s1 + $0x68] sm:$0xff]   ;;  %s930_s16 = smov (!%p165_p3, %s599_s16), 63 }
   0xc   : > { %v729_v1 = vld [vmem:[%s926_s1 + $0x38] sm:$0xff]   ;;  %640 = vmatprep.subr.bf16.mxu0 %v728_v0  ;;  %704 = vmatprep.subr.bf16.mxu1 %v728_v0  ;;  %v731_v3 = vld [vmem:[%s926_s1 + $0x30] sm:$0xff]   ;;  %v733_v5 = vld [vmem:[%s926_s1 + $0x28] sm:$0xff]   ;;  %s639_s4 = sshll.u32 %s930_s16, 3 }
   0xd   : > { %641 = vmatpush3.bf16.msra.mxu0 %v729_v1  ;;  %712 = vmatpush3.bf16.msra.mxu1 %v729_v1  ;;  %v734_v6 = vld [vmem:[%s926_s1 + $0x60] sm:$0xff]   ;;  %v736_v8 = vld [vmem:[%s926_s1 + $0x58] sm:$0xff]   ;;  %s839_s9 = scalar_lea.vmem %s925_s0, %s639_s4  ;;  %v738_v10 = vld [vmem:[%s926_s1 + $0x50] sm:$0xff]   ;;  %s890_s30 = scalar_lea.vmem %s928_s3, %s639_s4 }
   0xe   : > { %642 = vmatprep.subr.bf16.mxu0 %v730_v2  ;;  %705 = vmatprep.subr.bf16.mxu1 %v730_v2  ;;  %v735_v7 = vld [vmem:[%s926_s1 + $0x20] sm:$0xff]   ;;  %v737_v9 = vld [vmem:[%s926_s1 + $0x18] sm:$0xff]   ;;  %v739_v13 = vld [vmem:[%s926_s1 + $0x10] sm:$0xff]  }
   0xf   : > { %v746_v11 = vld [vmem:[%s839_s9 + $0x4] ss:$8 sps:$4 sm:$0xff]   ;;  %v744_v18 = vld [vmem:[%s839_s9] ss:$8 sps:$4 sm:$0xff]   ;;  %v750_v20 = vld [vmem:[%s839_s9 + $0x14] ss:$8 sps:$4 sm:$0xff]  }
  0x10   : > { %v749_v12 = vld [vmem:[%s839_s9 + $0x44] ss:$8 sps:$4 sm:$0xff]   ;;  %441 = vmatprep.mubr.bf16.mxu0 %v746_v11  ;;  %v747_v19 = vld [vmem:[%s839_s9 + $0x40] ss:$8 sps:$4 sm:$0xff]   ;;  %v752_v21 = vld [vmem:[%s839_s9 + $0x54] ss:$8 sps:$4 sm:$0xff]  }
  0x11   : > { %643 = vmatpush3.bf16.msra.mxu0 %v731_v3  ;;  %713 = vmatpush3.bf16.msra.mxu1 %v731_v3  ;;  %v740_v14 = vld [vmem:[%s926_s1 + $0x48] sm:$0xff]   ;;  %v742_v16 = vld [vmem:[%s926_s1 + $0x40] sm:$0xff]   ;;  %v754_v22 = vld [vmem:[%s839_s9 + $0x10] ss:$8 sps:$4 sm:$0xff]  }
  0x12   : > { %644 = vmatprep.subr.bf16.mxu0 %v732_v4  ;;  %706 = vmatprep.subr.bf16.mxu1 %v732_v4  ;;  %v741_v15 = vld [vmem:[%s926_s1 + $0x8] sm:$0xff]   ;;  %v743_v17 = vld [vmem:[%s926_s1] sm:$0xff]   ;;  %v755_v23 = vld [vmem:[%s839_s9 + $0x50] ss:$8 sps:$4 sm:$0xff]  }
  0x13   : > { %473 = vmatprep.mubr.bf16.mxu1 %v749_v12  ;;  %v756_v24 = vld [vmem:[%s839_s9 + $0x24] ss:$8 sps:$4 sm:$0xff]   ;;  %v760_v26 = vld [vmem:[%s839_s9 + $0x20] ss:$8 sps:$4 sm:$0xff]   ;;  %v762_v28 = vld [vmem:[%s839_s9 + $0x34] ss:$8 sps:$4 sm:$0xff]  }
  0x14   : > { %v758_v25 = vld [vmem:[%s839_s9 + $0x64] ss:$8 sps:$4 sm:$0xff]   ;;  %v761_v27 = vld [vmem:[%s839_s9 + $0x60] ss:$8 sps:$4 sm:$0xff]   ;;  %v764_v29 = vld [vmem:[%s839_s9 + $0x74] ss:$8 sps:$4 sm:$0xff]  }
  0x15   : > { %645 = vmatpush3.bf16.msra.mxu0 %v733_v5  ;;  %714 = vmatpush3.bf16.msra.mxu1 %v733_v5  ;;  %v766_v30 = vld [vmem:[%s839_s9 + $0x30] ss:$8 sps:$4 sm:$0xff]   ;;  %v881_v34 = vld [vmem:[%s927_s2] ss:$0 sm:$0xff] }
  0x16   : > { %646 = vmatprep.subr.bf16.mxu0 %v734_v6  ;;  %707 = vmatprep.subr.bf16.mxu1 %v734_v6  ;;  %v767_v31 = vld [vmem:[%s839_s9 + $0x70] ss:$8 sps:$4 sm:$0xff]  }
  0x19   : > { %647 = vmatpush3.bf16.msra.mxu0 %v735_v7  ;;  %715 = vmatpush3.bf16.msra.mxu1 %v735_v7 }
  0x1a   : > { %648 = vmatprep.subr.bf16.mxu0 %v736_v8  ;;  %708 = vmatprep.subr.bf16.mxu1 %v736_v8 }
  0x1d   : > { %649 = vmatpush3.bf16.msra.mxu0 %v737_v9  ;;  %716 = vmatpush3.bf16.msra.mxu1 %v737_v9 }
  0x1e   : > { %650 = vmatprep.subr.bf16.mxu0 %v738_v10  ;;  %709 = vmatprep.subr.bf16.mxu1 %v738_v10 }
  0x21   : > { %651 = vmatpush3.bf16.msra.mxu0 %v739_v13  ;;  %717 = vmatpush3.bf16.msra.mxu1 %v739_v13 }
  0x22   : > { %652 = vmatprep.subr.bf16.mxu0 %v740_v14  ;;  %710 = vmatprep.subr.bf16.mxu1 %v740_v14 }
  0x25   : > { %653 = vmatpush3.bf16.msra.mxu0 %v741_v15  ;;  %718 = vmatpush3.bf16.msra.mxu1 %v741_v15 }
  0x26   : > { %654 = vmatprep.subr.bf16.mxu0 %v742_v16  ;;  %711 = vmatprep.subr.bf16.mxu1 %v742_v16 }
  0x29   : > { %655 = vmatpush3.bf16.msra.mxu0 %v743_v17  ;;  %719 = vmatpush3.bf16.msra.mxu1 %v743_v17 }
  0x2c   : > { %442 = vmatmul.mubr.bf16.vlgmr.msra.gmra.mxu0 %v744_v18  ;;  %474 = vmatmul.mubr.bf16.vlgmr.msra.gmra.mxu1 %v747_v19 }
  0x2d   : > { %449 = vmatprep.mubr.bf16.mxu0 %v750_v20  ;;  %481 = vmatprep.mubr.bf16.mxu1 %v752_v21 }
  0x34   : > { %450 = vmatmul.mubr.bf16.gmra.mxu0 %v754_v22  ;;  %482 = vmatmul.mubr.bf16.gmra.mxu1 %v755_v23 }
  0x35   : > { %457 = vmatprep.mubr.bf16.mxu0 %v756_v24  ;;  %489 = vmatprep.mubr.bf16.mxu1 %v758_v25 }
  0x3c   : > { %458 = vmatmul.mubr.bf16.gmra.mxu0 %v760_v26  ;;  %490 = vmatmul.mubr.bf16.gmra.mxu1 %v761_v27 }
  0x3d   : > { %465 = vmatprep.mubr.bf16.mxu0 %v762_v28  ;;  %497 = vmatprep.mubr.bf16.mxu1 %v764_v29 }
  0x44   : > { %466 = vmatmul.mubr.bf16.gmra.mxu0 %v766_v30  ;;  %498 = vmatmul.mubr.bf16.gmra.mxu1 %v767_v31 }
  0xec   : > { %v656_v32 = vpop.f32.mrf.mxu0  ;;  %v680_v33 = vpop.f32.mrf.mxu1 }
  0xee   : > { %v657_v35 = vpop.f32.mrf.mxu0  ;;  %v681_v36 = vpop.f32.mrf.mxu1 }
  0xef   : > { %v658_v37 = vadd.f32 %v657_v35, %v656_v32  ;;  %v682_v38 = vadd.f32 %v681_v36, %v680_v33 }
  0xf0   : > { %v659_v39 = vpop.f32.mrf.mxu0  ;;  %v683_v40 = vpop.f32.mrf.mxu1 }
  0xf1   : > { %v444_v41 = vadd.f32 %v658_v37, %v881_v34  ;;  %v476_v42 = vadd.f32 %v682_v38, %v881_v34 }
  0xf2   : > { %v660_v43 = vpop.f32.mrf.mxu0  ;;  %v684_v44 = vpop.f32.mrf.mxu1 }
  0xf3   : > { %v506_v45 = vmax.f32 %v444_v41, 0.0  ;;  %v514_v46 = vmax.f32 %v476_v42, 0.0  ;;  %v661_v47 = vadd.f32 %v660_v43, %v659_v39  ;;  %v685_v48 = vadd.f32 %v684_v44, %v683_v40 }
  0xf4   : > { %v662_v49 = vpop.f32.mrf.mxu0  ;;  %v686_v50 = vpop.f32.mrf.mxu1 }
  0xf5   : > { %522 = vst [vmem:[%s890_s30] sm:$0xff] %v506_v45  ;;  %530 = vst [vmem:[%s890_s30 + $0x40] sm:$0xff] %v514_v46  ;;  %v447_v51 = vadd.f32 %v661_v47, %v881_v34  ;;  %v479_v52 = vadd.f32 %v685_v48, %v881_v34 }
  0xf6   : > { %v663_v53 = vpop.f32.mrf.mxu0  ;;  %v687_v54 = vpop.f32.mrf.mxu1 }
  0xf7   : > { %v507_v55 = vmax.f32 %v447_v51, 0.0  ;;  %v515_v56 = vmax.f32 %v479_v52, 0.0  ;;  %v664_v57 = vadd.f32 %v663_v53, %v662_v49  ;;  %v688_v58 = vadd.f32 %v687_v54, %v686_v50 }
  0xf8   : > { %v665_v59 = vpop.f32.mrf.mxu0  ;;  %v689_v60 = vpop.f32.mrf.mxu1 }
  0xf9   : > { %523 = vst [vmem:[%s890_s30 + $0x8] sm:$0xff] %v507_v55  ;;  %531 = vst [vmem:[%s890_s30 + $0x48] sm:$0xff] %v515_v56  ;;  %v452_v61 = vadd.f32 %v664_v57, %v881_v34  ;;  %v484_v62 = vadd.f32 %v688_v58, %v881_v34 }
  0xfa   : > { %v666_v63 = vpop.f32.mrf.mxu0  ;;  %v690_v0 = vpop.f32.mrf.mxu1 }
  0xfb   : > { %v508_v1 = vmax.f32 %v452_v61, 0.0  ;;  %v516_v2 = vmax.f32 %v484_v62, 0.0  ;;  %v667_v3 = vadd.f32 %v666_v63, %v665_v59  ;;  %v691_v4 = vadd.f32 %v690_v0, %v689_v60 }
  0xfc   : > { %v668_v5 = vpop.f32.mrf.mxu0  ;;  %v692_v6 = vpop.f32.mrf.mxu1 }
  0xfd   : > { %524 = vst [vmem:[%s890_s30 + $0x10] sm:$0xff] %v508_v1  ;;  %532 = vst [vmem:[%s890_s30 + $0x50] sm:$0xff] %v516_v2  ;;  %v455_v7 = vadd.f32 %v667_v3, %v881_v34  ;;  %v487_v8 = vadd.f32 %v691_v4, %v881_v34 }
  0xfe   : > { %v669_v9 = vpop.f32.mrf.mxu0  ;;  %v693_v10 = vpop.f32.mrf.mxu1 }
  0xff   : > { %v509_v11 = vmax.f32 %v455_v7, 0.0  ;;  %v517_v12 = vmax.f32 %v487_v8, 0.0  ;;  %v670_v13 = vadd.f32 %v669_v9, %v668_v5  ;;  %v694_v14 = vadd.f32 %v693_v10, %v692_v6 }
 0x100   : > { %v671_v15 = vpop.f32.mrf.mxu0  ;;  %v695_v16 = vpop.f32.mrf.mxu1 }
 0x101   : > { %525 = vst [vmem:[%s890_s30 + $0x18] sm:$0xff] %v509_v11  ;;  %533 = vst [vmem:[%s890_s30 + $0x58] sm:$0xff] %v517_v12  ;;  %v460_v17 = vadd.f32 %v670_v13, %v881_v34  ;;  %v492_v18 = vadd.f32 %v694_v14, %v881_v34 }
 0x102   : > { %v672_v19 = vpop.f32.mrf.mxu0  ;;  %v696_v20 = vpop.f32.mrf.mxu1 }
 0x103   : > { %v510_v21 = vmax.f32 %v460_v17, 0.0  ;;  %v518_v22 = vmax.f32 %v492_v18, 0.0  ;;  %v673_v23 = vadd.f32 %v672_v19, %v671_v15  ;;  %v697_v24 = vadd.f32 %v696_v20, %v695_v16 }
 0x104   : > { %v674_v25 = vpop.f32.mrf.mxu0  ;;  %v698_v26 = vpop.f32.mrf.mxu1 }
 0x105   : > { %526 = vst [vmem:[%s890_s30 + $0x20] sm:$0xff] %v510_v21  ;;  %534 = vst [vmem:[%s890_s30 + $0x60] sm:$0xff] %v518_v22  ;;  %v463_v27 = vadd.f32 %v673_v23, %v881_v34  ;;  %v495_v28 = vadd.f32 %v697_v24, %v881_v34 }
 0x106   : > { %v675_v29 = vpop.f32.mrf.mxu0  ;;  %v699_v30 = vpop.f32.mrf.mxu1 }
 0x107   : > { %v511_v31 = vmax.f32 %v463_v27, 0.0  ;;  %v519_v32 = vmax.f32 %v495_v28, 0.0  ;;  %v676_v33 = vadd.f32 %v675_v29, %v674_v25  ;;  %v700_v35 = vadd.f32 %v699_v30, %v698_v26 }
 0x108   : > { %v677_v36 = vpop.f32.mrf.mxu0  ;;  %v701_v37 = vpop.f32.mrf.mxu1 }
 0x109   : > { %527 = vst [vmem:[%s890_s30 + $0x28] sm:$0xff] %v511_v31  ;;  %535 = vst [vmem:[%s890_s30 + $0x68] sm:$0xff] %v519_v32  ;;  %v468_v38 = vadd.f32 %v676_v33, %v881_v34  ;;  %v500_v39 = vadd.f32 %v700_v35, %v881_v34 }
 0x10a   : > { %v678_v40 = vpop.f32.mrf.mxu0  ;;  %v702_v41 = vpop.f32.mrf.mxu1 }
 0x10b   : > { %v512_v42 = vmax.f32 %v468_v38, 0.0  ;;  %v520_v43 = vmax.f32 %v500_v39, 0.0  ;;  %v679_v44 = vadd.f32 %v678_v40, %v677_v36  ;;  %v703_v45 = vadd.f32 %v702_v41, %v701_v37 }
 0x10d   : > { %528 = vst [vmem:[%s890_s30 + $0x30] sm:$0xff] %v512_v42  ;;  %536 = vst [vmem:[%s890_s30 + $0x70] sm:$0xff] %v520_v43  ;;  %v471_v46 = vadd.f32 %v679_v44, %v881_v34  ;;  %v503_v47 = vadd.f32 %v703_v45, %v881_v34 }
 0x10f   : > { %v513_v48 = vmax.f32 %v471_v46, 0.0  ;;  %v521_v49 = vmax.f32 %v503_v47, 0.0 }
 0x111   : > { %529 = vst [vmem:[%s890_s30 + $0x38] sm:$0xff] %v513_v48  ;;  %537 = vst [vmem:[%s890_s30 + $0x78] sm:$0xff] %v521_v49 }
 0x112 PF: > { %s13_s12 = sadd.s32 1, %s774_s12  }
 0x113   : > { %p10_p4 = scmp.ge.s32.totalorder %s13_s12, 6  }
 0x115   :  { %12 = sbr.rel (!%p10_p4) target bundleno = 1 (0x1), region = 62 }

// kernel: convnet_forward.5
= control target key start
LH: loop header
LB: loop body
LE: loop exit
PB: predicated region body
PF: predicated region fallthrough
CT: control target
= control target key end

     0   :  { %v828_v39 = vmov 0.0   ;;  %vm829_vm0 = vmmov 0   ;;  %s1050_s1 = inlined_call_operand.vmem [shape: bf16[512,128], index: 1, kind: input, shape index: {}]   ;;  %s1051_s0 = inlined_call_operand.vmem [shape: bf16[8,512], index: 0, kind: input, shape index: {}]   ;;  %s1052_s3 = inlined_call_operand.vmem [shape: bf16[128,128], index: 3, kind: input, shape index: {}]   ;;  %s1053_s5 = inlined_call_operand.vmem [shape: bf16[128,128], index: 5, kind: input, shape index: {}]   ;;  %s1054_s2 = inlined_call_operand.vmem [shape: f32[1,128], index: 2, kind: input, shape index: {}]   ;;  %s1055_s4 = inlined_call_operand.vmem [shape: f32[1,128], index: 4, kind: input, shape index: {}]   ;;  %s1056_s6 = inlined_call_operand.vmem [shape: f32[1,128], index: 6, kind: input, shape index: {}]   ;;  %s1057_s7 = inlined_call_operand.vmem [shape: f32[8,128], index: 7, kind: output, shape index: {}]  }
   0x1   :  { %v776_v0 = vld [vmem:[%s1050_s1 + $0x78] sm:$0xff]   ;;  %v780_v4 = vld [vmem:[%s1050_s1 + $0x70] sm:$0xff]   ;;  %v784_v8 = vld [vmem:[%s1050_s1 + $0x68] sm:$0xff]  }
   0x2   :  { %v777_v1 = vld [vmem:[%s1050_s1 + $0xf8] sm:$0xff]   ;;  %672 = vmatprep.subr.bf16.mxu0 %v776_v0  ;;  %v781_v5 = vld [vmem:[%s1050_s1 + $0xf0] sm:$0xff]   ;;  %v785_v9 = vld [vmem:[%s1050_s1 + $0xe8] sm:$0xff]  }
   0x3   :  { %v778_v2 = vld [vmem:[%s1050_s1 + $0x38] sm:$0xff]   ;;  %694 = vmatprep.subr.bf16.mxu1 %v777_v1  ;;  %v782_v6 = vld [vmem:[%s1050_s1 + $0x30] sm:$0xff]   ;;  %v786_v10 = vld [vmem:[%s1050_s1 + $0x28] sm:$0xff]  }
   0x4   :  { %v779_v3 = vld [vmem:[%s1050_s1 + $0xb8] sm:$0xff]   ;;  %673 = vmatpush3.bf16.msra.mxu0 %v778_v2  ;;  %v783_v7 = vld [vmem:[%s1050_s1 + $0xb0] sm:$0xff]   ;;  %v787_v11 = vld [vmem:[%s1050_s1 + $0xa8] sm:$0xff]  }
   0x5   :  { %695 = vmatpush3.bf16.msra.mxu1 %v779_v3  ;;  %674 = vmatprep.subr.bf16.mxu0 %v780_v4  ;;  %v788_v12 = vld [vmem:[%s1050_s1 + $0x60] sm:$0xff]   ;;  %v792_v16 = vld [vmem:[%s1050_s1 + $0x58] sm:$0xff]   ;;  %v796_v20 = vld [vmem:[%s1050_s1 + $0x50] sm:$0xff]  }
   0x6   :  { %696 = vmatprep.subr.bf16.mxu1 %v781_v5  ;;  %v789_v13 = vld [vmem:[%s1050_s1 + $0xe0] sm:$0xff]   ;;  %v793_v17 = vld [vmem:[%s1050_s1 + $0xd8] sm:$0xff]   ;;  %v797_v21 = vld [vmem:[%s1050_s1 + $0xd0] sm:$0xff]  }
   0x7   :  { %v790_v14 = vld [vmem:[%s1050_s1 + $0x20] sm:$0xff]   ;;  %v794_v18 = vld [vmem:[%s1050_s1 + $0x18] sm:$0xff]   ;;  %v798_v22 = vld [vmem:[%s1050_s1 + $0x10] sm:$0xff]  }
   0x8   :  { %675 = vmatpush3.bf16.msra.mxu0 %v782_v6  ;;  %v791_v15 = vld [vmem:[%s1050_s1 + $0xa0] sm:$0xff]   ;;  %v795_v19 = vld [vmem:[%s1050_s1 + $0x98] sm:$0xff]   ;;  %v799_v23 = vld [vmem:[%s1050_s1 + $0x90] sm:$0xff]  }
   0x9   :  { %697 = vmatpush3.bf16.msra.mxu1 %v783_v7  ;;  %676 = vmatprep.subr.bf16.mxu0 %v784_v8  ;;  %v800_v24 = vld [vmem:[%s1050_s1 + $0x48] sm:$0xff]   ;;  %v804_v28 = vld [vmem:[%s1050_s1 + $0x40] sm:$0xff]   ;;  %v812_v38 = vld [vmem:[%s1052_s3 + $0x38] sm:$0xff]  }
   0xa   :  { %698 = vmatprep.subr.bf16.mxu1 %v785_v9  ;;  %v801_v25 = vld [vmem:[%s1050_s1 + $0xc8] sm:$0xff]   ;;  %v805_v29 = vld [vmem:[%s1050_s1 + $0xc0] sm:$0xff]   ;;  %v813_v40 = vld [vmem:[%s1052_s3 + $0x30] sm:$0xff]  }
   0xb   :  { %v802_v26 = vld [vmem:[%s1050_s1 + $0x8] sm:$0xff]   ;;  %v806_v30 = vld [vmem:[%s1050_s1] sm:$0xff]   ;;  %v816_v43 = vld [vmem:[%s1052_s3 + $0x18] sm:$0xff]  }
   0xc   :  { %677 = vmatpush3.bf16.msra.mxu0 %v786_v10  ;;  %v803_v27 = vld [vmem:[%s1050_s1 + $0x88] sm:$0xff]   ;;  %v807_v31 = vld [vmem:[%s1050_s1 + $0x80] sm:$0xff]   ;;  %v817_v44 = vld [vmem:[%s1052_s3 + $0x10] sm:$0xff]  }
   0xd   :  { %699 = vmatpush3.bf16.msra.mxu1 %v787_v11  ;;  %678 = vmatprep.subr.bf16.mxu0 %v788_v12  ;;  %v27_v32 = vld [vmem:[%s1051_s0] sm:$0xff]  ;;  %v28_v33 = vld [vmem:[%s1051_s0 + $0x8] sm:$0xff]  ;;  %v820_v47 = vld [vmem:[%s1053_s5 + $0x38] sm:$0xff]  }
   0xe   :  { %700 = vmatprep.subr.bf16.mxu1 %v789_v13  ;;  %v618_v34 = vcombine.low %v27_v32, %v27_v32  ;;  %v619_v35 = vcombine.high %v27_v32, %v27_v32  ;;  %v620_v36 = vcombine.low %v28_v33, %v28_v33  ;;  %v621_v37 = vcombine.high %v28_v33, %v28_v33  ;;  %v814_v41 = vld [vmem:[%s1052_s3 + $0x28] sm:$0xff]   ;;  %v815_v42 = vld [vmem:[%s1052_s3 + $0x20] sm:$0xff]   ;;  %v821_v48 = vld [vmem:[%s1053_s5 + $0x30] sm:$0xff]  }
   0xf   :  { %v818_v45 = vld [vmem:[%s1052_s3 + $0x8] sm:$0xff]   ;;  %v819_v46 = vld [vmem:[%s1052_s3] sm:$0xff]   ;;  %v824_v51 = vld [vmem:[%s1053_s5 + $0x18] sm:$0xff]  }
  0x10   :  { %679 = vmatpush3.bf16.msra.mxu0 %v790_v14  ;;  %338 = vmatprep.mubr.bf16.mxu0 %v619_v35  ;;  %v822_v49 = vld [vmem:[%s1053_s5 + $0x28] sm:$0xff]   ;;  %v823_v50 = vld [vmem:[%s1053_s5 + $0x20] sm:$0xff]   ;;  %v825_v52 = vld [vmem:[%s1053_s5 + $0x10] sm:$0xff]  }
  0x11   :  { %701 = vmatpush3.bf16.msra.mxu1 %v791_v15  ;;  %680 = vmatprep.subr.bf16.mxu0 %v792_v16  ;;  %v617_v55 = vld [vmem:[%s1054_s2] ss:$0 sm:$0xff]  ;;  %v826_v4 = vld [vmem:[%s1053_s5 + $0x8] sm:$0xff]  }
  0x12   :  { %702 = vmatprep.subr.bf16.mxu1 %v793_v17  ;;  %378 = vmatprep.mubr.bf16.mxu1 %v621_v37  ;;  %v827_v5 = vld [vmem:[%s1053_s5] sm:$0xff]  }
  0x13   :  { %v654_v6 = vld [vmem:[%s1055_s4] ss:$0 sm:$0xff] }
  0x14   :  { %681 = vmatpush3.bf16.msra.mxu0 %v794_v18  ;;  %v663_v14 = vld [vmem:[%s1056_s6] ss:$0 sm:$0xff] }
  0x15   :  { %703 = vmatpush3.bf16.msra.mxu1 %v795_v19  ;;  %682 = vmatprep.subr.bf16.mxu0 %v796_v20 }
  0x16   :  { %704 = vmatprep.subr.bf16.mxu1 %v797_v21 }
  0x18   :  { %683 = vmatpush3.bf16.msra.mxu0 %v798_v22 }
  0x19   :  { %705 = vmatpush3.bf16.msra.mxu1 %v799_v23  ;;  %684 = vmatprep.subr.bf16.mxu0 %v800_v24 }
  0x1a   :  { %706 = vmatprep.subr.bf16.mxu1 %v801_v25 }
  0x1c   :  { %685 = vmatpush3.bf16.msra.mxu0 %v802_v26 }
  0x1d   :  { %707 = vmatpush3.bf16.msra.mxu1 %v803_v27  ;;  %686 = vmatprep.subr.bf16.mxu0 %v804_v28 }
  0x1e   :  { %708 = vmatprep.subr.bf16.mxu1 %v805_v29 }
  0x20   :  { %687 = vmatpush3.bf16.msra.mxu0 %v806_v30 }
  0x21   :  { %709 = vmatpush3.bf16.msra.mxu1 %v807_v31  ;;  %734 = vmatprep.subr.bf16.mxu0 %v828_v39 }
  0x22   :  { %754 = vmatprep.subr.bf16.mxu1 %v828_v39 }
  0x23   :  { %339 = vmatmul.mubr.bf16.vlgmr.msra.gmra.mxu0 %v618_v34 }
  0x24   :  { %379 = vmatmul.mubr.bf16.vlgmr.msra.gmra.mxu1 %v620_v36  ;;  %735 = vmatpush3.bf16.msra.mxu0 %v812_v38 }
  0x25   :  { %736 = vmatprep.subr.bf16.mxu0 %v828_v39  ;;  %750 = vmatprep.mubr.msk.bf16.mxu0 %vm829_vm0, %v828_v39 }
  0x26   :  { %770 = vmatprep.mubr.msk.bf16.mxu1 %vm829_vm0, %v828_v39  ;;  %755 = vmatpush3.bf16.msra.mxu1 %v820_v47 }
  0x27   :  { %756 = vmatprep.subr.bf16.mxu1 %v828_v39 }
  0x28   :  { %737 = vmatpush3.bf16.msra.mxu0 %v813_v40 }
  0x29   :  { %738 = vmatprep.subr.bf16.mxu0 %v828_v39 }
  0x2a   :  { %757 = vmatpush3.bf16.msra.mxu1 %v821_v48 }
  0x2b   :  { %758 = vmatprep.subr.bf16.mxu1 %v828_v39 }
  0x2c   :  { %739 = vmatpush3.bf16.msra.mxu0 %v814_v41 }
  0x2d   :  { %740 = vmatprep.subr.bf16.mxu0 %v828_v39 }
  0x2e   :  { %759 = vmatpush3.bf16.msra.mxu1 %v822_v49 }
  0x2f   :  { %760 = vmatprep.subr.bf16.mxu1 %v828_v39 }
  0x30   :  { %741 = vmatpush3.bf16.msra.mxu0 %v815_v42 }
  0x31   :  { %742 = vmatprep.subr.bf16.mxu0 %v828_v39 }
  0x32   :  { %761 = vmatpush3.bf16.msra.mxu1 %v823_v50 }
  0x33   :  { %762 = vmatprep.subr.bf16.mxu1 %v828_v39 }
  0x34   :  { %743 = vmatpush3.bf16.msra.mxu0 %v816_v43 }
  0x35   :  { %744 = vmatprep.subr.bf16.mxu0 %v828_v39 }
  0x36   :  { %763 = vmatpush3.bf16.msra.mxu1 %v824_v51 }
  0x37   :  { %764 = vmatprep.subr.bf16.mxu1 %v828_v39 }
  0x38   :  { %745 = vmatpush3.bf16.msra.mxu0 %v817_v44 }
  0x39   :  { %746 = vmatprep.subr.bf16.mxu0 %v828_v39 }
  0x3a   :  { %765 = vmatpush3.bf16.msra.mxu1 %v825_v52 }
  0x3b   :  { %766 = vmatprep.subr.bf16.mxu1 %v828_v39 }
  0x3c   :  { %747 = vmatpush3.bf16.msra.mxu0 %v818_v45 }
  0x3d   :  { %748 = vmatprep.subr.bf16.mxu0 %v828_v39 }
  0x3e   :  { %767 = vmatpush3.bf16.msra.mxu1 %v826_v4 }
  0x3f   :  { %768 = vmatprep.subr.bf16.mxu1 %v828_v39 }
  0x40   :  { %749 = vmatpush3.bf16.msra.mxu0 %v819_v46 }
  0x42   :  { %769 = vmatpush3.bf16.msra.mxu1 %v827_v5 }
  0xe3   :  { %v688_v53 = vpop.f32.mrf.mxu0 }
  0xe4   :  { %v710_v54 = vpop.f32.mrf.mxu1 }
  0xe5   :  { %v689_v56 = vpop.f32.mrf.mxu0 }
  0xe6   :  { %v711_v57 = vpop.f32.mrf.mxu1  ;;  %v690_v58 = vadd.f32 %v689_v56, %v688_v53 }
  0xe7   :  { %v691_v59 = vpop.f32.mrf.mxu0  ;;  %v712_v62 = vadd.f32 %v711_v57, %v710_v54 }
  0xe8   :  { %v713_v60 = vpop.f32.mrf.mxu1  ;;  %v341_v61 = vadd.f32 %v690_v58, %v617_v55 }
  0xe9   :  { %v692_v63 = vpop.f32.mrf.mxu0 }
  0xea   :  { %v714_v0 = vpop.f32.mrf.mxu1  ;;  %v381_v1 = vadd.f32 %v712_v62, %v341_v61 }
  0xec   :  { %v386_v2 = vmax.f32 %v381_v1, 0.0 }
  0xee   :  { %v387_v3 = vpack.c.bf16 %v386_v2, %v386_v2 }
  0xf0   :  { %751 = vmatmul.mubr.bf16.vlgmr.msra.gmra.mxu0 %v387_v3 }
 0x1b0   :  { %v493_v7 = vpop.f32.mrf.mxu0 }
 0x1b1   :  { %v494_v8 = vadd.f32 %v654_v6, %v493_v7 }
 0x1b2   :  { %v752_v9 = vpop.f32.mrf.mxu0 }
 0x1b3   :  { %v499_v10 = vmax.f32 %v494_v8, 0.0 }
 0x1b4   :  { %v496_v11 = vpop.f32.mrf.mxu0 }
 0x1b5   :  { %v500_v12 = vpack.c.bf16 %v499_v10, %v499_v10 }
 0x1b6   :  { %v753_v13 = vpop.f32.mrf.mxu0 }
 0x1b7   :  { %771 = vmatmul.mubr.bf16.vlgmr.msra.gmra.mxu1 %v500_v12 }
 0x277   :  { %v606_v15 = vpop.f32.mrf.mxu1 }
 0x278   :  { %v607_v16 = vadd.f32 %v663_v14, %v606_v15 }
 0x279   :  { %v772_v17 = vpop.f32.mrf.mxu1 }
 0x27a   :  { %612 = vst [vmem:[%s1057_s7] sm:$0xff] %v607_v16 }
 0x27b   :  { %v609_v18 = vpop.f32.mrf.mxu1 }
 0x27d   :  { %v773_v19 = vpop.f32.mrf.mxu1 }

</bundles_post_ra>
